<compile_context>
chip_gen: v6e
topology: v6e:2x2x1
jax: 0.10.0
libtpu: 0.0.40
codegen_flags: <defaults>
</compile_context>

<pallas_src>
import functools

import jax
import jax.numpy as jnp
from jax import lax
from jax.experimental import pallas as pl
from jax.experimental.pallas import tpu as pltpu

EPS = 1e-5                        # nn.BatchNorm1d default eps
_INV_SQRT2 = 0.7071067811865476
_LANES = 128
_MAX_BLOCKS_PER_TILE = 128        # 128 * 128 = 16384 rows per grid tile
_INNER_COLS = 512                 # preferred inner-step width (lanes)
_VMEM_LIMIT = 32 * 1024 * 1024    # explicit scoped-VMEM limit (safe on v5e/v6e/v7x)


def _gelu_exact(h):
    # PyTorch default nn.GELU(): exact, erf-based.
    return 0.5 * h * (1.0 + lax.erf(h * jnp.float32(_INV_SQRT2)))


def _stats_kernel(x_ref, w1_ref, b1_ref, sum_ref, sq_ref, *, n_steps, cols):
    """Pass 1: per-channel partial sums of h = GELU(W1 @ x^T + b1).

    x_ref:   (n_steps, A, cols)  transposed input chunk for this tile
    sum_ref: (H, 128)  per-chunk partial sums  (resident across the tile axis)
    sq_ref:  (H, 128)  per-chunk partial sums of squares
    """
    @pl.when(pl.program_id(1) == 0)
    def _init():
        sum_ref[...] = jnp.zeros_like(sum_ref)
        sq_ref[...] = jnp.zeros_like(sq_ref)

    w1 = w1_ref[...]                          # (H, A)
    b1 = b1_ref[...]                          # (H, 1)
    hidden = w1.shape[0]
    lane_tiles = cols // _LANES

    def body(step, carry):
        s_acc, q_acc = carry
        xb = x_ref[step]                      # (A, cols)
        h = _gelu_exact(
            jnp.dot(w1, xb, preferred_element_type=jnp.float32) + b1)   # (H, cols)
        # Fold the cols/128 lane-tiles into the 128-lane accumulators (static
        # slices; no relayout, no cross-lane reduce inside the kernel).
        for t in range(lane_tiles):
            sl = slice(t * _LANES, (t + 1) * _LANES)
            hs = h[:, sl]
            s_acc = s_acc + hs
            q_acc = q_acc + hs * hs
        return s_acc, q_acc

    zeros = jnp.zeros((hidden, _LANES), jnp.float32)
    s_acc, q_acc = lax.fori_loop(0, n_steps, body, (zeros, zeros))
    sum_ref[...] += s_acc
    sq_ref[...] += q_acc


def _apply_kernel(x_ref, w1_ref, b1_ref, c_ref, const_ref, o_ref, *, n_steps, cols):
    """Pass 2: recompute h and apply fused BatchNorm-affine + Linear(H,1).

    out_row = c . h + const, emitted lane-dense straight off the MXU:
    (8,H) @ (H,cols) -> (8,cols), row 0 is the result for these `cols` rows.
    """
    w1 = w1_ref[...]                          # (H, A)
    b1 = b1_ref[...]                          # (H, 1)
    c8 = c_ref[...]                           # (8, H)  (c replicated over 8 rows)
    const = const_ref[...]                    # (1, 1)

    def body(step, carry):
        xb = x_ref[step]                      # (A, cols)
        h = _gelu_exact(
            jnp.dot(w1, xb, preferred_element_type=jnp.float32) + b1)   # (H, cols)
        res = jnp.dot(c8, h, preferred_element_type=jnp.float32)        # (8, cols)
        o_ref[pl.ds(step, 1), :] = res[0:1, :] + const                  # lane-dense row
        return carry

    lax.fori_loop(0, n_steps, body, 0)


def init_params(key, n_actions: int, hidden_size: int):
    """xavier_uniform_ weights, zero biases, BN gamma=1 / beta=0 (module init)."""
    k1, k2 = jax.random.split(key)
    bound1 = (6.0 / (n_actions + hidden_size)) ** 0.5
    w1 = jax.random.uniform(k1, (hidden_size, n_actions), jnp.float32, -bound1, bound1)
    bound2 = (6.0 / (hidden_size + 1)) ** 0.5
    w2 = jax.random.uniform(k2, (hidden_size,), jnp.float32, -bound2, bound2)
    b1 = jnp.zeros((hidden_size,), jnp.float32)
    b2 = jnp.zeros((), jnp.float32)
    gamma = jnp.ones((hidden_size,), jnp.float32)
    beta = jnp.zeros((hidden_size,), jnp.float32)
    return (w1, b1, gamma, beta, w2, b2)


@jax.jit
def critic_forward(x, params):
    """x: (T, B, n_actions) -> (T, B), matching the PyTorch module's forward."""
    w1, b1, gamma, beta, w2, b2 = params
    T, B, A = x.shape
    H = w1.shape[0]
    M = T * B

    # ---------------------------- tiling over M ----------------------------
    m_blocks = (M + _LANES - 1) // _LANES
    bpt = min(_MAX_BLOCKS_PER_TILE, m_blocks)       # 128-row blocks per tile
    tile_m = _LANES * bpt
    n_tiles = (m_blocks + bpt - 1) // bpt
    # Pass-1 megacore chunking (v7x has 2 TensorCores; harmless elsewhere).
    n_chunks = 2 if (n_tiles >= 2 and H % 8 == 0) else 1
    tiles_per_chunk = (n_tiles + n_chunks - 1) // n_chunks
    n_tiles_pad = n_chunks * tiles_per_chunk
    m_pad = n_tiles_pad * tile_m
    cols = _INNER_COLS if tile_m % _INNER_COLS == 0 else _LANES
    n_steps = tile_m // cols                        # inner fori steps per tile

    # Transposed, column-chunked input: (m_pad // cols, A, cols).  Padded rows
    # are exactly zero, so their h contribution is gelu(b1) (corrected below).
    x2 = x.reshape(M, A)
    if m_pad != M:
        x2 = jnp.pad(x2, ((0, m_pad - M), (0, 0)))
    xt3 = jnp.swapaxes(x2.reshape(m_pad // cols, cols, A), 1, 2)

    b1_col = b1.reshape(H, 1)

    # ------------- pass 1: per-channel partial sums / sums of squares -------------
    s_part, q_part = pl.pallas_call(
        functools.partial(_stats_kernel, n_steps=n_steps, cols=cols),
        out_shape=(jax.ShapeDtypeStruct((n_chunks * H, _LANES), jnp.float32),
                   jax.ShapeDtypeStruct((n_chunks * H, _LANES), jnp.float32)),
        grid=(n_chunks, tiles_per_chunk),
        in_specs=[
            pl.BlockSpec((n_steps, A, cols),
                         lambda c, i: (c * tiles_per_chunk + i, 0, 0)),
            pl.BlockSpec((H, A), lambda c, i: (0, 0)),
            pl.BlockSpec((H, 1), lambda c, i: (0, 0)),
        ],
        out_specs=(
            pl.BlockSpec((H, _LANES), lambda c, i: (c, 0)),
            pl.BlockSpec((H, _LANES), lambda c, i: (c, 0)),
        ),
        compiler_params=pltpu.CompilerParams(
            dimension_semantics=("parallel", "arbitrary"),
            vmem_limit_bytes=_VMEM_LIMIT),
    )(xt3, w1, b1_col)

    # ----- tiny per-channel math between passes (plain XLA, negligible) -----
    h_sum = jnp.sum(s_part.reshape(n_chunks, H, _LANES), axis=(0, 2))   # (H,)
    h_sq = jnp.sum(q_part.reshape(n_chunks, H, _LANES), axis=(0, 2))    # (H,)
    pad_rows = m_pad - M
    if pad_rows:
        # Padded x rows are exactly zero -> h = gelu(b1); subtract them exactly.
        g0 = _gelu_exact(b1)
        h_sum = h_sum - jnp.float32(pad_rows) * g0
        h_sq = h_sq - jnp.float32(pad_rows) * g0 * g0
    mean = h_sum / jnp.float32(M)
    var = h_sq / jnp.float32(M) - mean * mean        # biased var, as in torch
    invstd = lax.rsqrt(var + jnp.float32(EPS))
    c_vec = gamma * invstd * w2                      # (H,)
    const = b2 + jnp.sum(beta * w2) - jnp.sum(mean * c_vec)
    c8 = jnp.broadcast_to(c_vec.reshape(1, H), (8, H))
    const_in = jnp.reshape(const, (1, 1))

    # --------------- pass 2: fused BN-affine + Linear(H, 1) ---------------
    out_rows = n_tiles_pad * n_steps
    out_dense = pl.pallas_call(
        functools.partial(_apply_kernel, n_steps=n_steps, cols=cols),
        out_shape=jax.ShapeDtypeStruct((out_rows, cols), jnp.float32),
        grid=(n_tiles_pad,),
        in_specs=[
            pl.BlockSpec((n_steps, A, cols), lambda i: (i, 0, 0)),
            pl.BlockSpec((H, A), lambda i: (0, 0)),
            pl.BlockSpec((H, 1), lambda i: (0, 0)),
            pl.BlockSpec((8, H), lambda i: (0, 0)),
            pl.BlockSpec((1, 1), lambda i: (0, 0)),
        ],
        out_specs=pl.BlockSpec((n_steps, cols), lambda i: (i, 0)),
        compiler_params=pltpu.CompilerParams(
            dimension_semantics=("parallel",),
            vmem_limit_bytes=_VMEM_LIMIT),
    )(xt3, w1, b1_col, c8, const_in)

    # Lane-dense slab -> flat rows -> (T, B)   (Flatten(-2,-1))
    return out_dense.reshape(m_pad)[:M].reshape(T, B)


def critic_reference(x, params):
    """Pure-JAX reference mirroring the PyTorch forward (correctness check)."""
    w1, b1, gamma, beta, w2, b2 = params
    h = jnp.einsum("tba,ha->tbh", x, w1) + b1
    h = 0.5 * h * (1.0 + lax.erf(h * jnp.float32(_INV_SQRT2)))
    mean = h.mean(axis=(0, 1))
    var = ((h - mean) ** 2).mean(axis=(0, 1))
    hn = (h - mean) * lax.rsqrt(var + EPS) * gamma + beta
    return jnp.einsum("tbh,h->tb", hn, w2) + b2


if __name__ == "__main__":
    # small shapes consistent with the module: (seq=8, batch=4, n_actions=8), hidden=32
    T, B, N_ACTIONS, HIDDEN = 8, 4, 8, 32

    key = jax.random.PRNGKey(0)
    k_params, k_x, k1, k2, k3, k4 = jax.random.split(key, 6)
    w1, b1, gamma, beta, w2, b2 = init_params(k_params, N_ACTIONS, HIDDEN)
    # Perturb biases / BN affine so the const / beta / padding-correction paths
    # are actually exercised by the correctness check.
    b1 = 0.1 * jax.random.normal(k1, (HIDDEN,), jnp.float32)
    beta = 0.1 * jax.random.normal(k2, (HIDDEN,), jnp.float32)
    gamma = 1.0 + 0.1 * jax.random.normal(k3, (HIDDEN,), jnp.float32)
    b2 = 0.1 * jax.random.normal(k4, (), jnp.float32)
    params = (w1, b1, gamma, beta, w2, b2)

    x = jax.random.normal(k_x, (T, B, N_ACTIONS), jnp.float32)

    out = critic_forward(x, params)
    out = jax.block_until_ready(out)

    ref = critic_reference(x, params)
    assert out.shape == (T, B)
    assert jnp.allclose(out, ref, atol=1e-3, rtol=1e-3), "mismatch vs JAX reference"

    print("KERNEL_OK")
</pallas_src>

<mosaic_0001>
module attributes {stable_mosaic.version = 11 : i64} {
  func.func @_stats_kernel(%arg0: i32, %arg1: i32, %arg2: memref<1x8x128xf32, #tpu.memory_space<vmem>>, %arg3: memref<32x8xf32, #tpu.memory_space<vmem>>, %arg4: memref<32x1xf32, #tpu.memory_space<vmem>>, %arg5: memref<32x128xf32, #tpu.memory_space<vmem>>, %arg6: memref<32x128xf32, #tpu.memory_space<vmem>>) attributes {dimension_semantics = [#tpu.dimension_semantics<parallel>, #tpu.dimension_semantics<arbitrary>], iteration_bounds = array<i64: 1, 1>, scalar_prefetch = 0 : i64, scratch_operands = 0 : i64, tpu.core_type = #tpu.core_type<tc>, window_params = [{transform_indices = @transform_0, window_bounds = array<i64: 1, 8, 128>}, {pipeline_mode = #tpu.pipeline_mode<synchronous>, transform_indices = @transform_1, window_bounds = array<i64: 32, 8>}, {pipeline_mode = #tpu.pipeline_mode<synchronous>, transform_indices = @transform_2, window_bounds = array<i64: 32, 1>}, {transform_indices = @transform_3, window_bounds = array<i64: 32, 128>}, {transform_indices = @transform_4, window_bounds = array<i64: 32, 128>}]} {
    %c0_i32 = arith.constant 0 : i32
    %0 = arith.cmpi eq, %arg1, %c0_i32 : i32
    %1 = arith.extui %0 : i1 to i32
    %c0_i32_0 = arith.constant 0 : i32
    %2 = arith.cmpi ne, %1, %c0_i32_0 : i32
    scf.if %2 {
      %cst_19 = arith.constant 0.000000e+00 : f32
      %29 = vector.broadcast %cst_19 : f32 to vector<32x128xf32>
      %c0_20 = arith.constant 0 : index
      %c0_21 = arith.constant 0 : index
      %30 = vector.load %arg5[%c0_20, %c0_21] : memref<32x128xf32, #tpu.memory_space<vmem>>, vector<32x128xf32>
      tpu.vector_store %arg5[%c0_20, %c0_21], %29 {strides = array<i32>} : memref<32x128xf32, #tpu.memory_space<vmem>>, vector<32x128xf32>,
      %cst_22 = arith.constant 0.000000e+00 : f32
      %31 = vector.broadcast %cst_22 : f32 to vector<32x128xf32>
      %c0_23 = arith.constant 0 : index
      %c0_24 = arith.constant 0 : index
      %32 = vector.load %arg6[%c0_23, %c0_24] : memref<32x128xf32, #tpu.memory_space<vmem>>, vector<32x128xf32>
      tpu.vector_store %arg6[%c0_23, %c0_24], %31 {strides = array<i32>} : memref<32x128xf32, #tpu.memory_space<vmem>>, vector<32x128xf32>,
    } else {
    }
    %c0 = arith.constant 0 : index
    %c0_1 = arith.constant 0 : index
    %3 = vector.load %arg3[%c0, %c0_1] : memref<32x8xf32, #tpu.memory_space<vmem>>, vector<32x8xf32>
    %c0_2 = arith.constant 0 : index
    %c0_3 = arith.constant 0 : index
    %4 = vector.load %arg4[%c0_2, %c0_3] : memref<32x1xf32, #tpu.memory_space<vmem>>, vector<32x1xf32>
    %cst = arith.constant 0.000000e+00 : f32
    %5 = vector.broadcast %cst : f32 to vector<32x128xf32>
    %c0_i32_4 = arith.constant 0 : i32
    %6 = arith.index_cast %c0_i32_4 : i32 to index
    %c0_5 = arith.constant 0 : index
    %c0_6 = arith.constant 0 : index
    %7 = vector.load %arg2[%6, %c0_5, %c0_6] : memref<1x8x128xf32, #tpu.memory_space<vmem>>, vector<1x8x128xf32>
    %8 = vector.shape_cast %7 : vector<1x8x128xf32> to vector<8x128xf32>
    %cst_7 = arith.constant dense<0.000000e+00> : vector<32x128xf32>
    %9 = tpu.matmul %3, %8, %cst_7 {dimension_numbers = #tpu.dot_dimension_numbers<[1], [0], [0], [1], [0, 0, 1, 1], [], []>} : vector<32x8xf32>, vector<8x128xf32>, vector<32x128xf32> -> vector<32x128xf32>
    %10 = vector.broadcast %4 : vector<32x1xf32> to vector<32x128xf32>
    %11 = arith.addf %9, %10 : vector<32x128xf32>
    %cst_8 = arith.constant 5.000000e-01 : f32
    %12 = vector.broadcast %cst_8 : f32 to vector<32x128xf32>
    %13 = arith.mulf %12, %11 : vector<32x128xf32>
    %cst_9 = arith.constant 0.707106769 : f32
    %14 = vector.broadcast %cst_9 : f32 to vector<32x128xf32>
    %15 = arith.mulf %11, %14 : vector<32x128xf32>
    %16 = math.erf %15 : vector<32x128xf32>
    %cst_10 = arith.constant 1.000000e+00 : f32
    %17 = vector.broadcast %cst_10 : f32 to vector<32x128xf32>
    %18 = arith.addf %17, %16 : vector<32x128xf32>
    %19 = arith.mulf %13, %18 : vector<32x128xf32>
    %20 = arith.addf %5, %19 : vector<32x128xf32>
    %21 = arith.mulf %19, %19 : vector<32x128xf32>
    %22 = arith.addf %5, %21 : vector<32x128xf32>
    %c1_i32 = arith.constant 1 : i32
    %c0_11 = arith.constant 0 : index
    %c0_12 = arith.constant 0 : index
    %23 = vector.load %arg5[%c0_11, %c0_12] : memref<32x128xf32, #tpu.memory_space<vmem>>, vector<32x128xf32>
    %24 = arith.addf %23, %20 : vector<32x128xf32>
    %c0_13 = arith.constant 0 : index
    %c0_14 = arith.constant 0 : index
    %25 = vector.load %arg5[%c0_13, %c0_14] : memref<32x128xf32, #tpu.memory_space<vmem>>, vector<32x128xf32>
    tpu.vector_store %arg5[%c0_13, %c0_14], %24 {strides = array<i32>} : memref<32x128xf32, #tpu.memory_space<vmem>>, vector<32x128xf32>,
    %c0_15 = arith.constant 0 : index
    %c0_16 = arith.constant 0 : index
    %26 = vector.load %arg6[%c0_15, %c0_16] : memref<32x128xf32, #tpu.memory_space<vmem>>, vector<32x128xf32>
    %27 = arith.addf %26, %22 : vector<32x128xf32>
    %c0_17 = arith.constant 0 : index
    %c0_18 = arith.constant 0 : index
    %28 = vector.load %arg6[%c0_17, %c0_18] : memref<32x128xf32, #tpu.memory_space<vmem>>, vector<32x128xf32>
    tpu.vector_store %arg6[%c0_17, %c0_18], %27 {strides = array<i32>} : memref<32x128xf32, #tpu.memory_space<vmem>>, vector<32x128xf32>,
    return
  }
  func.func @transform_0(%arg0: i32, %arg1: i32) -> (i32, i32, i32) {
    %c1_i32 = arith.constant 1 : i32
    %0 = arith.muli %arg0, %c1_i32 : i32
    %1 = arith.addi %0, %arg1 : i32
    %c0_i32 = arith.constant 0 : i32
    %c0_i32_0 = arith.constant 0 : i32
    %c0_i32_1 = arith.constant 0 : i32
    return %1, %c0_i32, %c0_i32_0 : i32, i32, i32
  }
  func.func @transform_1(%arg0: i32, %arg1: i32) -> (i32, i32) {
    %c0_i32 = arith.constant 0 : i32
    %c0_i32_0 = arith.constant 0 : i32
    %c0_i32_1 = arith.constant 0 : i32
    return %c0_i32, %c0_i32_0 : i32, i32
  }
  func.func @transform_2(%arg0: i32, %arg1: i32) -> (i32, i32) {
    %c0_i32 = arith.constant 0 : i32
    %c0_i32_0 = arith.constant 0 : i32
    %c0_i32_1 = arith.constant 0 : i32
    return %c0_i32, %c0_i32_0 : i32, i32
  }
  func.func @transform_3(%arg0: i32, %arg1: i32) -> (i32, i32) {
    %c0_i32 = arith.constant 0 : i32
    %c0_i32_0 = arith.constant 0 : i32
    return %arg0, %c0_i32 : i32, i32
  }
  func.func @transform_4(%arg0: i32, %arg1: i32) -> (i32, i32) {
    %c0_i32 = arith.constant 0 : i32
    %c0_i32_0 = arith.constant 0 : i32
    return %arg0, %c0_i32 : i32, i32
  }
}

module attributes {stable_mosaic.version = 11 : i64} {
  func.func @_apply_kernel(%arg0: i32, %arg1: memref<1x8x128xf32, #tpu.memory_space<vmem>>, %arg2: memref<32x8xf32, #tpu.memory_space<vmem>>, %arg3: memref<32x1xf32, #tpu.memory_space<vmem>>, %arg4: memref<8x32xf32, #tpu.memory_space<vmem>>, %arg5: memref<1x1xf32, #tpu.memory_space<vmem>>, %arg6: memref<1x128xf32, #tpu.memory_space<vmem>>) attributes {dimension_semantics = [#tpu.dimension_semantics<parallel>], iteration_bounds = array<i64: 1>, scalar_prefetch = 0 : i64, scratch_operands = 0 : i64, tpu.core_type = #tpu.core_type<tc>, window_params = [{transform_indices = @transform_0, window_bounds = array<i64: 1, 8, 128>}, {pipeline_mode = #tpu.pipeline_mode<synchronous>, transform_indices = @transform_1, window_bounds = array<i64: 32, 8>}, {pipeline_mode = #tpu.pipeline_mode<synchronous>, transform_indices = @transform_2, window_bounds = array<i64: 32, 1>}, {pipeline_mode = #tpu.pipeline_mode<synchronous>, transform_indices = @transform_3, window_bounds = array<i64: 8, 32>}, {pipeline_mode = #tpu.pipeline_mode<synchronous>, transform_indices = @transform_4, window_bounds = array<i64: 1, 1>}, {transform_indices = @transform_5, window_bounds = array<i64: 1, 128>}]} {
    %c0 = arith.constant 0 : index
    %c0_0 = arith.constant 0 : index
    %0 = vector.load %arg2[%c0, %c0_0] : memref<32x8xf32, #tpu.memory_space<vmem>>, vector<32x8xf32>
    %c0_1 = arith.constant 0 : index
    %c0_2 = arith.constant 0 : index
    %1 = vector.load %arg3[%c0_1, %c0_2] : memref<32x1xf32, #tpu.memory_space<vmem>>, vector<32x1xf32>
    %c0_3 = arith.constant 0 : index
    %c0_4 = arith.constant 0 : index
    %2 = vector.load %arg4[%c0_3, %c0_4] : memref<8x32xf32, #tpu.memory_space<vmem>>, vector<8x32xf32>
    %c0_5 = arith.constant 0 : index
    %c0_6 = arith.constant 0 : index
    %3 = vector.load %arg5[%c0_5, %c0_6] : memref<1x1xf32, #tpu.memory_space<vmem>>, vector<1x1xf32>
    %c0_i32 = arith.constant 0 : i32
    %4 = arith.index_cast %c0_i32 : i32 to index
    %c0_7 = arith.constant 0 : index
    %c0_8 = arith.constant 0 : index
    %5 = vector.load %arg1[%4, %c0_7, %c0_8] : memref<1x8x128xf32, #tpu.memory_space<vmem>>, vector<1x8x128xf32>
    %6 = vector.shape_cast %5 : vector<1x8x128xf32> to vector<8x128xf32>
    %cst = arith.constant dense<0.000000e+00> : vector<32x128xf32>
    %7 = tpu.matmul %0, %6, %cst {dimension_numbers = #tpu.dot_dimension_numbers<[1], [0], [0], [1], [0, 0, 1, 1], [], []>} : vector<32x8xf32>, vector<8x128xf32>, vector<32x128xf32> -> vector<32x128xf32>
    %8 = vector.broadcast %1 : vector<32x1xf32> to vector<32x128xf32>
    %9 = arith.addf %7, %8 : vector<32x128xf32>
    %cst_9 = arith.constant 5.000000e-01 : f32
    %10 = vector.broadcast %cst_9 : f32 to vector<32x128xf32>
    %11 = arith.mulf %10, %9 : vector<32x128xf32>
    %cst_10 = arith.constant 0.707106769 : f32
    %12 = vector.broadcast %cst_10 : f32 to vector<32x128xf32>
    %13 = arith.mulf %9, %12 : vector<32x128xf32>
    %14 = math.erf %13 : vector<32x128xf32>
    %cst_11 = arith.constant 1.000000e+00 : f32
    %15 = vector.broadcast %cst_11 : f32 to vector<32x128xf32>
    %16 = arith.addf %15, %14 : vector<32x128xf32>
    %17 = arith.mulf %11, %16 : vector<32x128xf32>
    %cst_12 = arith.constant dense<0.000000e+00> : vector<8x128xf32>
    %18 = tpu.matmul %2, %17, %cst_12 {dimension_numbers = #tpu.dot_dimension_numbers<[1], [0], [0], [1], [0, 0, 1, 1], [], []>} : vector<8x32xf32>, vector<32x128xf32>, vector<8x128xf32> -> vector<8x128xf32>
    %19 = vector.extract_strided_slice %18 {offsets = [0, 0], sizes = [1, 128], strides = [1, 1]} : vector<8x128xf32> to vector<1x128xf32>
    %20 = vector.broadcast %3 : vector<1x1xf32> to vector<1x128xf32>
    %21 = arith.addf %19, %20 : vector<1x128xf32>
    %22 = arith.index_cast %c0_i32 : i32 to index
    %c0_13 = arith.constant 0 : index
    %23 = vector.load %arg6[%22, %c0_13] : memref<1x128xf32, #tpu.memory_space<vmem>>, vector<1x128xf32>
    tpu.vector_store %arg6[%22, %c0_13], %21 {strides = array<i32>} : memref<1x128xf32, #tpu.memory_space<vmem>>, vector<1x128xf32>,
    %c1_i32 = arith.constant 1 : i32
    return
  }
  func.func @transform_0(%arg0: i32) -> (i32, i32, i32) {
    %c0_i32 = arith.constant 0 : i32
    %c0_i32_0 = arith.constant 0 : i32
    %c0_i32_1 = arith.constant 0 : i32
    return %arg0, %c0_i32, %c0_i32_0 : i32, i32, i32
  }
  func.func @transform_1(%arg0: i32) -> (i32, i32) {
    %c0_i32 = arith.constant 0 : i32
    %c0_i32_0 = arith.constant 0 : i32
    %c0_i32_1 = arith.constant 0 : i32
    return %c0_i32, %c0_i32_0 : i32, i32
  }
  func.func @transform_2(%arg0: i32) -> (i32, i32) {
    %c0_i32 = arith.constant 0 : i32
    %c0_i32_0 = arith.constant 0 : i32
    %c0_i32_1 = arith.constant 0 : i32
    return %c0_i32, %c0_i32_0 : i32, i32
  }
  func.func @transform_3(%arg0: i32) -> (i32, i32) {
    %c0_i32 = arith.constant 0 : i32
    %c0_i32_0 = arith.constant 0 : i32
    %c0_i32_1 = arith.constant 0 : i32
    return %c0_i32, %c0_i32_0 : i32, i32
  }
  func.func @transform_4(%arg0: i32) -> (i32, i32) {
    %c0_i32 = arith.constant 0 : i32
    %c0_i32_0 = arith.constant 0 : i32
    %c0_i32_1 = arith.constant 0 : i32
    return %c0_i32, %c0_i32_0 : i32, i32
  }
  func.func @transform_5(%arg0: i32) -> (i32, i32) {
    %c0_i32 = arith.constant 0 : i32
    %c0_i32_0 = arith.constant 0 : i32
    return %arg0, %c0_i32 : i32, i32
  }
}

</mosaic_0001>

<bundles_post_ra>
// kernel: critic_forward.2
= control target key start
LH: loop header
LB: loop body
LE: loop exit
PB: predicated region body
PF: predicated region fallthrough
CT: control target
= control target key end

     0   :  { %vm74_vm0 = vcmask 64512   ;;  %v273_v3 = vmov 0   ;;  %s354_s0 = inlined_call_operand.vmem [shape: f32[1,8,128], index: 0, kind: input, shape index: {}]   ;;  %s355_s1 = inlined_call_operand.vmem [shape: f32[32,8], index: 1, kind: input, shape index: {}]   ;;  %s356_s2 = inlined_call_operand.vmem [shape: f32[32,1], index: 2, kind: input, shape index: {}]   ;;  %s357_s3 = inlined_call_operand.vmem [shape: f32[32,128], index: 3, kind: output, shape index: {0}]   ;;  %s358_s4 = inlined_call_operand.vmem [shape: f32[32,128], index: 4, kind: output, shape index: {1}]  }
   0x1   :  { %v53_v0 = vld [vmem:[%s354_s0] sm:$0xff]  ;;  %v47_v2 = vld [vmem:[%s355_s1 + $0x10] sm:$0xff]  ;;  %264 = vset.pattern.permute.xlu1 %v273_v3  ;;  %263 = vset.pattern.permute.xlu0 %v273_v3  ;;  %v46_v4 = vld [vmem:[%s355_s1 + $0x8] sm:$0xff] }
   0x2   :  { %v45_v1 = vld [vmem:[%s355_s1] sm:$0xff]  ;;  %251 = vmatprep.subr.mxu0 %v53_v0  ;;  %259 = vmatprep.subr.mxu1 %v53_v0  ;;  %v48_v5 = vld [vmem:[%s355_s1 + $0x18] sm:$0xff]  ;;  %v51_v6 = vld [vmem:[%s356_s2 + $0x10] sm:$0xff] }
   0x3   :  { %252 = vmatpush3.msra.mxu0 %v53_v0  ;;  %260 = vmatpush3.msra.mxu1 %v53_v0  ;;  %v49_v7 = vld [vmem:[%s356_s2] sm:$0xff]  ;;  %v52_v8 = vld [vmem:[%s356_s2 + $0x18] sm:$0xff]  ;;  %v50_v9 = vld [vmem:[%s356_s2 + $0x8] sm:$0xff] }
   0x4   :  { %253 = vmatprep.mubr.msk.f32.mxu0 %vm74_vm0, %v45_v1  ;;  %256 = vmatprep.mubr.msk.f32.mxu1 %vm74_vm0, %v47_v2 }
   0x5   :  { %254 = vmatmul.mubr.msk.f32.vlgmr.msra.gmra.mxu0 %vm74_vm0, %v46_v4  ;;  %257 = vmatmul.mubr.msk.f32.vlgmr.msra.gmra.mxu1 %vm74_vm0, %v48_v5 }
   0x6   :  { %66 = vperm.xlu1 %264, %v51_v6   ;;  %56 = vperm.xlu0 %263, %v49_v7  }
   0xa   :  { %71 = vperm.xlu1 %264, %v52_v8   ;;  %61 = vperm.xlu0 %263, %v50_v9  }
  0x81   :  { %v67_v10 = vpop.permute.xlu1 %66  ;;  %v57_v11 = vpop.permute.xlu0 %56 }
  0x85   :  { %v72_v12 = vpop.permute.xlu1 %71  ;;  %v62_v13 = vpop.permute.xlu0 %61 }
  0xc5   :  { %v255_v14 = vpop.f32.mrf.mxu0  ;;  %v258_v15 = vpop.f32.mrf.mxu1 }
  0xc6   :  { %v159_v16 = vadd.f32 %v255_v14, %v62_v13  ;;  %v169_v17 = vadd.f32 %v258_v15, %v72_v12 }
  0xc7   :  { %v153_v18 = vpop.f32.mrf.mxu0  ;;  %v163_v19 = vpop.f32.mrf.mxu1 }
  0xc8   :  { %v177_v20 = vmul.f32 0.70710677, %v159_v16  ;;  %v179_v21 = vmul.f32 0.70710677, %v169_v17  ;;  %v154_v22 = vadd.f32 %v153_v18, %v57_v11  ;;  %v164_v23 = vadd.f32 %v163_v19, %v67_v10 }
  0xc9   :  { %v173_v28 = vmul.f32 0.5, %v159_v16  ;;  %v175_v30 = vmul.f32 0.5, %v169_v17 }
  0xca   :  { %265 = verf.f32 %v177_v20  ;;  %v176_v24 = vmul.f32 0.70710677, %v154_v22  ;;  %v178_v25 = vmul.f32 0.70710677, %v164_v23  ;;  %v172_v36 = vmul.f32 0.5, %v154_v22 }
  0xcb   :  { %267 = verf.f32 %v179_v21  ;;  %v174_v39 = vmul.f32 0.5, %v164_v23 }
  0xcc   :  { %269 = verf.f32 %v176_v24 }
  0xcd   :  { %271 = verf.f32 %v178_v25 }
  0xd7   :  { %v266_v26 = vpop.eup %265 }
  0xd8   :  { %v268_v27 = vpop.eup %267  ;;  %v185_v29 = vadd.f32 1.0, %v266_v26 }
  0xd9   :  { %v187_v31 = vadd.f32 1.0, %v268_v27  ;;  %v270_v32 = vpop.eup %269 }
  0xda   :  { %v189_v33 = vmul.f32 %v185_v29, %v173_v28  ;;  %v272_v34 = vpop.eup %271  ;;  %v184_v37 = vadd.f32 1.0, %v270_v32 }
  0xdb   :  { %v191_v35 = vmul.f32 %v187_v31, %v175_v30  ;;  %v186_v40 = vadd.f32 1.0, %v272_v34 }
  0xdc   :  { %v197_v38 = vmul.f32 %v189_v33, %v189_v33  ;;  %v188_v42 = vmul.f32 %v184_v37, %v172_v36  ;;  %213 = vst [vmem:[%s357_s3 + $0x8] sm:$0xff] %v189_v33 }
  0xdd   :  { %v199_v41 = vmul.f32 %v191_v35, %v191_v35  ;;  %v190_v43 = vmul.f32 %v186_v40, %v174_v39  ;;  %215 = vst [vmem:[%s357_s3 + $0x18] sm:$0xff] %v191_v35 }
  0xde   :  { %v196_v44 = vmul.f32 %v188_v42, %v188_v42  ;;  %225 = vst [vmem:[%s358_s4 + $0x8] sm:$0xff] %v197_v38  ;;  %212 = vst [vmem:[%s357_s3] sm:$0xff] %v188_v42 }
  0xdf   :  { %v198_v45 = vmul.f32 %v190_v43, %v190_v43  ;;  %227 = vst [vmem:[%s358_s4 + $0x18] sm:$0xff] %v199_v41  ;;  %214 = vst [vmem:[%s357_s3 + $0x10] sm:$0xff] %v190_v43 }
  0xe0   :  { %224 = vst [vmem:[%s358_s4] sm:$0xff] %v196_v44 }
  0xe1   :  { %226 = vst [vmem:[%s358_s4 + $0x10] sm:$0xff] %v198_v45 }

// kernel: critic_forward.3
= control target key start
LH: loop header
LB: loop body
LE: loop exit
PB: predicated region body
PF: predicated region fallthrough
CT: control target
= control target key end

     0   :  { %vm53_vm0 = vcmask 64512   ;;  %v307_v3 = vmov 0   ;;  %v308_v12 = vmov 0.0   ;;  %vm309_vm1 = vmmov 0   ;;  %s380_s0 = inlined_call_operand.vmem [shape: f32[1,8,128], index: 0, kind: input, shape index: {}]   ;;  %s381_s1 = inlined_call_operand.vmem [shape: f32[32,8], index: 1, kind: input, shape index: {}]   ;;  %s382_s2 = inlined_call_operand.vmem [shape: f32[32,1], index: 2, kind: input, shape index: {}]   ;;  %s383_s4 = inlined_call_operand.<no memory space> [shape: f32[1,1], index: 4, kind: input, shape index: {}]   ;;  %s384_s3 = inlined_call_operand.vmem [shape: f32[8,32], index: 3, kind: input, shape index: {}]   ;;  %s385_s5 = inlined_call_operand.vmem [shape: f32[1,128], index: 5, kind: output, shape index: {}]  }
   0x1   :  { %v32_v0 = vld [vmem:[%s380_s0] sm:$0xff]  ;;  %v23_v2 = vld [vmem:[%s381_s1 + $0x8] sm:$0xff]  ;;  %297 = vset.pattern.permute.xlu0 %v307_v3  ;;  %298 = vset.pattern.permute.xlu1 %v307_v3  ;;  %v10_v4 = vstv %s383_s4  ;;  %v24_v5 = vld [vmem:[%s381_s1 + $0x10] sm:$0xff]  ;;  %vm171_vm2 = vcmask 261120   ;;  %v250_v46 = vlaneseq }
   0x2   :  { %v22_v1 = vld [vmem:[%s381_s1] sm:$0xff]  ;;  %275 = vmatprep.subr.mxu0 %v32_v0  ;;  %v29_v6 = vld [vmem:[%s382_s2 + $0x18] sm:$0xff]  ;;  %11 = vst [vmem:[#allocation2] sm:$0x1] %v10_v4  ;;  %v27_v7 = vld [vmem:[%s382_s2 + $0x8] sm:$0xff]  ;;  %283 = vmatprep.subr.mxu1 %v308_v12 }
   0x3   :  { %277 = vmatprep.mubr.msk.f32.mxu0 %vm53_vm0, %v22_v1  ;;  %276 = vmatpush3.msra.mxu0 %v32_v0  ;;  %v28_v8 = vld [vmem:[%s382_s2 + $0x10] sm:$0xff]  ;;  %v25_v9 = vld [vmem:[%s381_s1 + $0x18] sm:$0xff]  ;;  %v26_v10 = vld [vmem:[%s382_s2] sm:$0xff]  ;;  %v251_v47 = vshrl.u32 %v250_v46, 7 }
   0x4   :  { %50 = vperm.xlu0 %297, %v29_v6   ;;  %278 = vmatmul.mubr.msk.f32.vlgmr.msra.gmra.mxu0 %vm53_vm0, %v23_v2  ;;  %v30_v45 = vld [vmem:[%s384_s3] sm:$0xff] }
   0x5   :  { %40 = vperm.xlu1 %298, %v27_v7   ;;  %280 = vmatprep.mubr.msk.f32.mxu0 %vm53_vm0, %v24_v5  ;;  %v252_v48 = vsub.s32 0, %v251_v47 }
   0x6   :  { %291 = vmatprep.mubr.msk.f32.mxu1 %vm309_vm1, %v308_v12 }
   0x8   :  { %45 = vperm.xlu0 %297, %v28_v8   ;;  %281 = vmatmul.mubr.msk.f32.gmra.mxu0 %vm53_vm0, %v25_v9 }
   0x9   :  { %35 = vperm.xlu1 %298, %v26_v10   ;;  %v31_v11 = vld [vmem:[#allocation2] sm:$0x1] }
   0xc   :  { %247 = vperm.xlu0 %297, %v31_v11  }
  0x7f   :  { %v51_v14 = vpop.permute.xlu0 %50 }
  0x80   :  { %v41_v13 = vpop.permute.xlu1 %40 }
  0x83   :  { %v46_v23 = vpop.permute.xlu0 %45 }
  0x84   :  { %v36_v16 = vpop.permute.xlu1 %35 }
  0x87   :  { %v248_v49 = vpop.permute.xlu0 %247 }
  0x88   :  { %v253_v50 = vrot.slane %v248_v49, %v252_v48 }
  0xc4   :  { %v279_v15 = vpop.f32.mrf.mxu0 }
  0xc5   :  { %v138_v17 = vadd.f32 %v279_v15, %v41_v13 }
  0xc6   :  { %v132_v18 = vpop.f32.mrf.mxu0 }
  0xc7   :  { %v133_v19 = vadd.f32 %v132_v18, %v36_v16  ;;  %v156_v20 = vmul.f32 0.70710677, %v138_v17  ;;  %v152_v39 = vmul.f32 0.5, %v138_v17 }
  0xc8   :  { %v282_v21 = vpop.f32.mrf.mxu0 }
  0xc9   :  { %v148_v22 = vadd.f32 %v282_v21, %v51_v14  ;;  %v155_v24 = vmul.f32 0.70710677, %v133_v19  ;;  %299 = verf.f32 %v156_v20  ;;  %v151_v42 = vmul.f32 0.5, %v133_v19 }
  0xca   :  { %v142_v25 = vpop.f32.mrf.mxu0 }
  0xcb   :  { %v158_v26 = vmul.f32 0.70710677, %v148_v22  ;;  %v143_v27 = vadd.f32 %v142_v25, %v46_v23  ;;  %v154_v32 = vmul.f32 0.5, %v148_v22 }
  0xcd   :  { %301 = verf.f32 %v158_v26  ;;  %v157_v28 = vmul.f32 0.70710677, %v143_v27  ;;  %v153_v35 = vmul.f32 0.5, %v143_v27 }
  0xce   :  { %303 = verf.f32 %v155_v24 }
  0xcf   :  { %305 = verf.f32 %v157_v28 }
  0xd6   :  { %v300_v29 = vpop.eup %299 }
  0xd7   :  { %v164_v38 = vadd.f32 1.0, %v300_v29 }
  0xd9   :  { %v168_v43 = vmul.f32 %v164_v38, %v152_v39 }
  0xda   :  { %v302_v30 = vpop.eup %301 }
  0xdb   :  { %v304_v31 = vpop.eup %303  ;;  %v166_v33 = vadd.f32 1.0, %v302_v30 }
  0xdc   :  { %v306_v34 = vpop.eup %305  ;;  %v163_v41 = vadd.f32 1.0, %v304_v31 }
  0xdd   :  { %v170_v36 = vmul.f32 %v166_v33, %v154_v32  ;;  %v165_v37 = vadd.f32 1.0, %v306_v34 }
  0xde   :  { %v167_v44 = vmul.f32 %v163_v41, %v151_v42 }
  0xdf   :  { %284 = vmatpush3.msra.mxu1 %v170_v36  ;;  %v169_v40 = vmul.f32 %v165_v37, %v153_v35 }
  0xe0   :  { %285 = vmatprep.subr.mxu1 %v308_v12 }
  0xe1   :  { %286 = vmatpush3.msra.mxu1 %v169_v40 }
  0xe2   :  { %287 = vmatprep.subr.mxu1 %v308_v12 }
  0xe3   :  { %288 = vmatpush3.msra.mxu1 %v168_v43 }
  0xe4   :  { %289 = vmatprep.subr.mxu1 %v308_v12 }
  0xe5   :  { %290 = vmatpush3.msra.mxu1 %v167_v44 }
  0xe6   :  { %292 = vmatmul.mubr.msk.f32.vlgmr.msra.gmra.mxu1 %vm171_vm2, %v30_v45 }
 0x1a6   :  { %v241_v51 = vpop.f32.mrf.mxu1 }
 0x1a7   :  { %v254_v52 = vadd.f32 %v253_v50, %v241_v51 }
 0x1a8   :  { %v293_v53 = vpop.f32.mrf.mxu1 }
 0x1a9   :  { %255 = vst [vmem:[%s385_s5] sm:$0x1] %v254_v52 }

</bundles_post_ra>
